<compile_context>
chip_gen: v5e
topology: v5e:2x2
jax: 0.10.0
libtpu: 0.0.40
codegen_flags: <defaults>
</compile_context>

<pallas_src>
import functools

import jax
import jax.numpy as jnp
from jax.experimental import pallas as pl
from jax.experimental.pallas import tpu as pltpu


# ------------------------- Pallas kernel ----------------------------------

def _head_kernel(x_ref, wt_ref, b_ref, cls_ref, reg_ref, *, c_reg):
    """Fused dual 1x1-conv head in NCHW layout.

    x_ref:   (1, C_in, tm)            activation tile (spatial on lanes)
    wt_ref:  (C_reg + C_cls, C_in)    fused weights (reg rows first), resident
    b_ref:   (C_reg + C_cls, 1)       fused bias (f32), resident
    cls_ref: (1, C_cls, tm)           output tiles, already NCHW-ordered
    reg_ref: (1, C_reg, tm)
    """
    x = x_ref[0]                                                   # (C_in, tm)
    out = jnp.dot(wt_ref[...], x,
                  preferred_element_type=jnp.float32)              # (C_fused, tm) f32
    b = b_ref[...]                                                 # (C_fused, 1) f32
    # Fuse bias-add + downcast per output slice: avoids materializing a
    # separate full-width (C_fused, tm) f32 intermediate (v5e vst slot).
    reg_ref[0] = (out[:c_reg] + b[:c_reg]).astype(reg_ref.dtype)   # 8-aligned (48 rows)
    cls_ref[0] = (out[c_reg:] + b[c_reg:]).astype(cls_ref.dtype)   # 7 rows, masked store


def _dual_head_matmul(x3, wt_fused, b_fused, *, c_cls, c_reg, tm, out_dtype):
    """x3: (B, C_in, HW) — HW need NOT divide tm; returns (cls3, reg3)."""
    B, c_in, hw = x3.shape
    c_fused = c_reg + c_cls

    # Partial last spatial block handled by Pallas masking (no pad / slice).
    n_s = pl.cdiv(hw, tm)
    grid = (B, n_s)
    kernel = functools.partial(_head_kernel, c_reg=c_reg)

    in_itemsize = jnp.dtype(x3.dtype).itemsize
    out_itemsize = jnp.dtype(out_dtype).itemsize

    # Explicit scoped-VMEM budget: double-buffered (x tile + both out tiles)
    # plus resident weights/bias plus slack; capped below v7x's 64 MiB.
    per_set = c_in * tm * in_itemsize + c_fused * tm * out_itemsize
    w_bytes = (wt_fused.size * jnp.dtype(wt_fused.dtype).itemsize
               + b_fused.size * jnp.dtype(b_fused.dtype).itemsize)
    vmem_limit = int(min(max(2 * per_set + 2 * w_bytes + (2 << 20), 32 << 20),
                         56 << 20))

    cost = pl.CostEstimate(
        flops=2 * B * hw * c_in * c_fused,
        transcendentals=0,
        bytes_accessed=int(
            x3.size * in_itemsize
            + wt_fused.size * jnp.dtype(wt_fused.dtype).itemsize
            + b_fused.size * jnp.dtype(b_fused.dtype).itemsize
            + B * hw * c_fused * out_itemsize),
    )

    cls_out, reg_out = pl.pallas_call(
        kernel,
        out_shape=(
            jax.ShapeDtypeStruct((B, c_cls, hw), out_dtype),
            jax.ShapeDtypeStruct((B, c_reg, hw), out_dtype),
        ),
        grid_spec=pltpu.PrefetchScalarGridSpec(
            num_scalar_prefetch=0,
            grid=grid,
            in_specs=[
                pl.BlockSpec((1, c_in, tm), lambda b, s: (b, 0, s)),   # x tile
                pl.BlockSpec((c_fused, c_in), lambda b, s: (0, 0)),    # fused W (resident)
                pl.BlockSpec((c_fused, 1), lambda b, s: (0, 0)),       # fused bias
            ],
            out_specs=[
                pl.BlockSpec((1, c_cls, tm), lambda b, s: (b, 0, s)),
                pl.BlockSpec((1, c_reg, tm), lambda b, s: (b, 0, s)),
            ],
        ),
        compiler_params=pltpu.CompilerParams(
            dimension_semantics=("parallel", "parallel"),
            vmem_limit_bytes=vmem_limit),
        cost_estimate=cost,
    )(x3, wt_fused, b_fused)
    return cls_out, reg_out


# ------------------------- Module wrapper ----------------------------------

class RdrFiltSrtHeadPallas:
    """JAX/Pallas re-implementation of RdrFiltSrtHead.forward (the two 1x1 convs).

    out_dtype=None  -> outputs follow the input dtype (PyTorch semantics).
    out_dtype=jnp.bfloat16 -> opt-in bf16 outputs (halves the dominant
        55-channel output HBM stream; ~1.3x on a memory-bound kernel) if
        downstream loss/NMS preprocessing tolerates it.
    """

    def __init__(self, input_channels, num_anchor_per_grid, num_box_code, key,
                 tm_max=16384, out_dtype=None):
        self.input_channels = input_channels
        self.num_anchor_per_grid = num_anchor_per_grid
        self.num_box_code = num_box_code
        self.c_cls = 1 + num_anchor_per_grid
        self.c_reg = num_anchor_per_grid * num_box_code
        self.tm_max = tm_max
        self.out_dtype = out_dtype

        # Deterministic synthetic parameters matching nn.Conv2d(k=1) init:
        # weight (C_out, C_in), bias (C_out,), U(-1/sqrt(fan_in), +).
        k1, k2, k3, k4 = jax.random.split(key, 4)
        bound = 1.0 / float(input_channels) ** 0.5
        self.w_cls_t = jax.random.uniform(
            k1, (self.c_cls, input_channels), jnp.float32, -bound, bound)
        self.b_cls = jax.random.uniform(
            k2, (self.c_cls,), jnp.float32, -bound, bound)
        self.w_reg_t = jax.random.uniform(
            k3, (self.c_reg, input_channels), jnp.float32, -bound, bound)
        self.b_reg = jax.random.uniform(
            k4, (self.c_reg,), jnp.float32, -bound, bound)

        # Fused parameters: reg rows first so the large in-kernel output slice
        # is 8-sublane aligned (c_reg = 48 is a multiple of 8).  Precompute the
        # bf16 weight copy once (no per-call cast); bias stays f32 always.
        self.wt_fused_f32 = jnp.concatenate([self.w_reg_t, self.w_cls_t], axis=0)
        self.wt_fused_bf16 = self.wt_fused_f32.astype(jnp.bfloat16)
        self.b_fused = jnp.concatenate([self.b_reg, self.b_cls]).reshape(-1, 1)

    @functools.partial(jax.jit, static_argnums=0)
    def _forward_bev(self, bev_feat_nchw):
        B, C, H, W = bev_feat_nchw.shape
        assert C == self.input_channels
        hw = H * W
        # NCHW -> (B, C, H*W): free reshape, no transpose, no padding.
        x3 = bev_feat_nchw.reshape(B, C, hw)

        # Spatial (lane) tile: multiple of 128, capped at tm_max.  Non-
        # divisible hw is handled by Pallas partial-block masking (no pad).
        hw_r = pl.cdiv(hw, 128) * 128
        tm = min(self.tm_max, hw_r)
        # v7x dual-TensorCore balance: keep the grid at >= 2 steps when the
        # map is large enough, so both "parallel" cores get work.
        if B * pl.cdiv(hw, tm) < 2 and hw_r >= 256:
            tm = pl.cdiv(pl.cdiv(hw_r, 2), 128) * 128

        # bf16 activations use the precomputed bf16 weight copy (bandwidth win
        # on v5e/v6e/v7x; accumulation and bias stay f32).  f32 stays exact.
        if bev_feat_nchw.dtype == jnp.bfloat16:
            wt = self.wt_fused_bf16
        else:
            wt = self.wt_fused_f32
        out_dtype = self.out_dtype if self.out_dtype is not None else bev_feat_nchw.dtype

        cls3, reg3 = _dual_head_matmul(
            x3, wt, self.b_fused,
            c_cls=self.c_cls, c_reg=self.c_reg, tm=tm, out_dtype=out_dtype)

        cls_pred = cls3.reshape(B, self.c_cls, H, W)   # already NCHW ordered
        reg_pred = reg3.reshape(B, self.c_reg, H, W)
        return cls_pred, reg_pred

    def forward(self, dict_item):
        cls_pred, reg_pred = self._forward_bev(dict_item['bev_feat'])
        dict_item['pred'] = {'cls': cls_pred, 'reg': reg_pred}
        return dict_item


# ------------------------- Demo / check ------------------------------------

if __name__ == "__main__":
    key = jax.random.PRNGKey(0)
    k_param, k_x = jax.random.split(key)

    # Config-implied small sizes:
    #   HEAD.DIM = 32 input channels
    #   3 anchor classes x (1 size * 2 rotations * 1 bottom) = 6 anchors/grid
    #   BOX_CODE of length 8  -> reg channels = 48, cls channels = 7
    C_in = 32
    num_anchor_per_grid = 6
    num_box_code = 8
    c_cls = 1 + num_anchor_per_grid
    c_reg = num_anchor_per_grid * num_box_code

    head = RdrFiltSrtHeadPallas(C_in, num_anchor_per_grid, num_box_code, k_param)

    def ref_heads(x_nchw):
        xf = x_nchw.astype(jnp.float32)
        rc = (jnp.einsum('bchw,oc->bohw', xf, head.w_cls_t)
              + head.b_cls[None, :, None, None])
        rr = (jnp.einsum('bchw,oc->bohw', xf, head.w_reg_t)
              + head.b_reg[None, :, None, None])
        return rc, rr

    # --- A) standard small map, f32 (exact path) ---------------------------
    xa = jax.random.normal(k_x, (2, C_in, 16, 16), dtype=jnp.float32)
    out = head.forward({'bev_feat': xa})
    cls_a = jax.block_until_ready(out['pred']['cls'])
    reg_a = jax.block_until_ready(out['pred']['reg'])
    ref_c, ref_r = ref_heads(xa)
    assert cls_a.shape == (2, c_cls, 16, 16)
    assert reg_a.shape == (2, c_reg, 16, 16)
    assert jnp.allclose(cls_a, ref_c, atol=1e-4, rtol=1e-4)
    assert jnp.allclose(reg_a, ref_r, atol=1e-4, rtol=1e-4)

    # --- B) non-128-multiple spatial map -> partial last block, no padding --
    xb = jax.random.normal(jax.random.PRNGKey(1), (2, C_in, 10, 13),
                           dtype=jnp.float32)
    out_b = head.forward({'bev_feat': xb})
    cls_b = jax.block_until_ready(out_b['pred']['cls'])
    reg_b = jax.block_until_ready(out_b['pred']['reg'])
    ref_cb, ref_rb = ref_heads(xb)
    assert cls_b.shape == (2, c_cls, 10, 13)
    assert reg_b.shape == (2, c_reg, 10, 13)
    assert jnp.allclose(cls_b, ref_cb, atol=1e-4, rtol=1e-4)
    assert jnp.allclose(reg_b, ref_rb, atol=1e-4, rtol=1e-4)

    # --- C) B=1 bf16 input -> grid split into 2 spatial tiles (v7x balance),
    #        precomputed bf16 weights, f32 accumulation ----------------------
    xc = jax.random.normal(jax.random.PRNGKey(2), (1, C_in, 32, 32),
                           dtype=jnp.float32).astype(jnp.bfloat16)
    out_c = head.forward({'bev_feat': xc})
    cls_c = jax.block_until_ready(out_c['pred']['cls']).astype(jnp.float32)
    reg_c = jax.block_until_ready(out_c['pred']['reg']).astype(jnp.float32)
    ref_cc, ref_rc = ref_heads(xc)
    assert cls_c.shape == (1, c_cls, 32, 32)
    assert reg_c.shape == (1, c_reg, 32, 32)
    assert jnp.allclose(cls_c, ref_cc, atol=1e-1, rtol=1e-1)
    assert jnp.allclose(reg_c, ref_rc, atol=1e-1, rtol=1e-1)

    print("KERNEL_OK")
</pallas_src>

<mosaic_0001>
module attributes {stable_mosaic.version = 11 : i64} {
  func.func @_head_kernel(%arg0: i32, %arg1: i32, %arg2: memref<1x32x256xf32, #tpu.memory_space<vmem>>, %arg3: memref<55x32xf32, #tpu.memory_space<vmem>>, %arg4: memref<55x1xf32, #tpu.memory_space<vmem>>, %arg5: memref<1x7x256xf32, #tpu.memory_space<vmem>>, %arg6: memref<1x48x256xf32, #tpu.memory_space<vmem>>) attributes {dimension_semantics = [#tpu.dimension_semantics<parallel>, #tpu.dimension_semantics<parallel>], iteration_bounds = array<i64: 2, 1>, scalar_prefetch = 0 : i64, scratch_operands = 0 : i64, tpu.core_type = #tpu.core_type<tc>, window_params = [{transform_indices = @transform_0, window_bounds = array<i64: 1, 32, 256>}, {pipeline_mode = #tpu.pipeline_mode<synchronous>, transform_indices = @transform_1, window_bounds = array<i64: 55, 32>}, {pipeline_mode = #tpu.pipeline_mode<synchronous>, transform_indices = @transform_2, window_bounds = array<i64: 55, 1>}, {transform_indices = @transform_3, window_bounds = array<i64: 1, 7, 256>}, {transform_indices = @transform_4, window_bounds = array<i64: 1, 48, 256>}]} {
    %c0 = arith.constant 0 : index
    %c0_0 = arith.constant 0 : index
    %c0_1 = arith.constant 0 : index
    %0 = vector.load %arg2[%c0, %c0_0, %c0_1] : memref<1x32x256xf32, #tpu.memory_space<vmem>>, vector<1x32x256xf32>
    %1 = vector.shape_cast %0 : vector<1x32x256xf32> to vector<32x256xf32>
    %c0_2 = arith.constant 0 : index
    %c0_3 = arith.constant 0 : index
    %2 = vector.load %arg3[%c0_2, %c0_3] : memref<55x32xf32, #tpu.memory_space<vmem>>, vector<55x32xf32>
    %cst = arith.constant dense<0.000000e+00> : vector<55x256xf32>
    %3 = tpu.matmul %2, %1, %cst {dimension_numbers = #tpu.dot_dimension_numbers<[1], [0], [0], [1], [0, 0, 1, 1], [], []>} : vector<55x32xf32>, vector<32x256xf32>, vector<55x256xf32> -> vector<55x256xf32>
    %c0_4 = arith.constant 0 : index
    %c0_5 = arith.constant 0 : index
    %4 = vector.load %arg4[%c0_4, %c0_5] : memref<55x1xf32, #tpu.memory_space<vmem>>, vector<55x1xf32>
    %5 = vector.extract_strided_slice %3 {offsets = [0, 0], sizes = [48, 256], strides = [1, 1]} : vector<55x256xf32> to vector<48x256xf32>
    %6 = vector.extract_strided_slice %4 {offsets = [0, 0], sizes = [48, 1], strides = [1, 1]} : vector<55x1xf32> to vector<48x1xf32>
    %7 = vector.broadcast %6 : vector<48x1xf32> to vector<48x256xf32>
    %8 = arith.addf %5, %7 : vector<48x256xf32>
    %c0_6 = arith.constant 0 : index
    %c0_7 = arith.constant 0 : index
    %c0_8 = arith.constant 0 : index
    %9 = vector.load %arg6[%c0_6, %c0_7, %c0_8] : memref<1x48x256xf32, #tpu.memory_space<vmem>>, vector<1x48x256xf32>
    %10 = vector.shape_cast %9 : vector<1x48x256xf32> to vector<48x256xf32>
    %11 = vector.shape_cast %8 : vector<48x256xf32> to vector<1x48x256xf32>
    tpu.vector_store %arg6[%c0_6, %c0_7, %c0_8], %11 {strides = array<i32>} : memref<1x48x256xf32, #tpu.memory_space<vmem>>, vector<1x48x256xf32>,
    %12 = vector.extract_strided_slice %3 {offsets = [48, 0], sizes = [7, 256], strides = [1, 1]} : vector<55x256xf32> to vector<7x256xf32>
    %13 = vector.extract_strided_slice %4 {offsets = [48, 0], sizes = [7, 1], strides = [1, 1]} : vector<55x1xf32> to vector<7x1xf32>
    %14 = vector.broadcast %13 : vector<7x1xf32> to vector<7x256xf32>
    %15 = arith.addf %12, %14 : vector<7x256xf32>
    %c0_9 = arith.constant 0 : index
    %c0_10 = arith.constant 0 : index
    %c0_11 = arith.constant 0 : index
    %16 = vector.load %arg5[%c0_9, %c0_10, %c0_11] : memref<1x7x256xf32, #tpu.memory_space<vmem>>, vector<1x7x256xf32>
    %17 = vector.shape_cast %16 : vector<1x7x256xf32> to vector<7x256xf32>
    %18 = vector.shape_cast %15 : vector<7x256xf32> to vector<1x7x256xf32>
    tpu.vector_store %arg5[%c0_9, %c0_10, %c0_11], %18 {strides = array<i32>} : memref<1x7x256xf32, #tpu.memory_space<vmem>>, vector<1x7x256xf32>,
    return
  }
  func.func @transform_0(%arg0: i32, %arg1: i32) -> (i32, i32, i32) {
    %c0_i32 = arith.constant 0 : i32
    %c0_i32_0 = arith.constant 0 : i32
    return %arg0, %c0_i32, %arg1 : i32, i32, i32
  }
  func.func @transform_1(%arg0: i32, %arg1: i32) -> (i32, i32) {
    %c0_i32 = arith.constant 0 : i32
    %c0_i32_0 = arith.constant 0 : i32
    %c0_i32_1 = arith.constant 0 : i32
    return %c0_i32, %c0_i32_0 : i32, i32
  }
  func.func @transform_2(%arg0: i32, %arg1: i32) -> (i32, i32) {
    %c0_i32 = arith.constant 0 : i32
    %c0_i32_0 = arith.constant 0 : i32
    %c0_i32_1 = arith.constant 0 : i32
    return %c0_i32, %c0_i32_0 : i32, i32
  }
  func.func @transform_3(%arg0: i32, %arg1: i32) -> (i32, i32, i32) {
    %c0_i32 = arith.constant 0 : i32
    %c0_i32_0 = arith.constant 0 : i32
    return %arg0, %c0_i32, %arg1 : i32, i32, i32
  }
  func.func @transform_4(%arg0: i32, %arg1: i32) -> (i32, i32, i32) {
    %c0_i32 = arith.constant 0 : i32
    %c0_i32_0 = arith.constant 0 : i32
    return %arg0, %c0_i32, %arg1 : i32, i32, i32
  }
}

</mosaic_0001>

<bundles_post_ra>
// kernel: _forward_bev.1
= control target key start
LH: loop header
LB: loop body
LE: loop exit
PB: predicated region body
PF: predicated region fallthrough
CT: control target
= control target key end

     0   :  { %s696_s15 = smov 0   ;;  %s698_s16 = smov 0   ;;  %s807_s0 = inlined_call_operand.vmem [shape: f32[2,32,256], index: 0, kind: input, shape index: {}]   ;;  %s808_s1 = inlined_call_operand.vmem [shape: f32[55,32], index: 1, kind: input, shape index: {}]   ;;  %s809_s2 = inlined_call_operand.vmem [shape: f32[55,1], index: 2, kind: input, shape index: {}]   ;;  %s810_s3 = inlined_call_operand.vmem [shape: f32[2,7,256], index: 3, kind: output, shape index: {0}]   ;;  %s811_s4 = inlined_call_operand.vmem [shape: f32[2,48,256], index: 4, kind: output, shape index: {1}]  }
   0x1   :  { %s700_s17 = smov 0  }
   0x2 LB: > { %s27_s18 = sadd.s32 1, %s664_s16  ;;  %p585_p0 = scmp.ge.s32.totalorder %s668_s17, 1  ;;  %s668_s17 = sphi %s700_s17, %s15_s17   ;;  %s664_s16 = sphi %s698_s16, %s813_s16   ;;  %s660_s15 = sphi %s696_s15, %s812_s15  }
   0x3   : > { %p29_p1 = scmp.ge.s32.totalorder %s27_s18, 2  ;;  %p188_p2 = scmp.lt.s32.totalorder %s668_s17, 3 }
   0x5   : > { %s815_s18 = smov (%p29_p1, %s27_s18), 0  ;;  %p189_p3 = pnand %p585_p0, %p188_p2 }
   0x6   : > { %p232_p4 = scmp.lt.s32.totalorder (!%p189_p3), %s660_s15, 1 }
   0x7   : > { %192 = sbr.rel (%p189_p3) target bundleno = 178 (0xb2), region = 32 }
   0xc   : > { %v374_v0 = vld [vmem:[%s809_s2] sm:$0xff]  ;;  %v670_v1 = vmov 0   ;;  %s817_s15 = smov (!%p232_p4, %s660_s15), 1  ;;  %v376_v2 = vld [vmem:[%s809_s2 + $0x10] sm:$0xff]  ;;  %vm276_vm0 = vcmask 261120   ;;  %v375_v13 = vld [vmem:[%s809_s2 + $0x8] sm:$0xff] }
   0xd   : > { %643 = vset.pattern.permute.xlu0 %v670_v1  ;;  %644 = vset.pattern.permute.xlu1 %v670_v1  ;;  %s607_s23 = sshll.u32 %s817_s15, 6  ;;  %v269_v11 = vld [vmem:[%s808_s1] sm:$0xff]  ;;  %v377_v14 = vld [vmem:[%s809_s2 + $0x18] sm:$0xff]  ;;  %v270_v16 = vld [vmem:[%s808_s1 + $0x8] sm:$0xff]  ;;  %s617_s29 = smul.u32 96, %s817_s15 }
   0xe   : > { %383 = vperm.xlu0 %643, %v374_v0   ;;  %645 = vset.pattern.permute.xlu2 %v670_v1  ;;  %s239_s26 = scalar_lea.vmem %s807_s0, %s607_s23  ;;  %v273_v12 = vld [vmem:[%s808_s1 + $0x20] sm:$0xff]  ;;  %v274_v17 = vld [vmem:[%s808_s1 + $0x28] sm:$0xff]  ;;  %v380_v18 = vld [vmem:[%s809_s2 + $0x30] sm:$0x7f]  ;;  %s608_s7 = sshll.u32 %s817_s15, 4 }
   0xf   : > { %393 = vperm.xlu1 %644, %v376_v2   ;;  %v267_v3 = vld [vmem:[%s239_s26 + $0x30] sm:$0xff]  ;;  %v268_v4 = vld [vmem:[%s239_s26 + $0x38] sm:$0xff]  ;;  %v265_v5 = vld [vmem:[%s239_s26 + $0x20] sm:$0xff]  ;;  %s780_s6 = scalar_lea.vmem %s811_s4, %s617_s29  ;;  %s249_s10 = scalar_lea.vmem %s810_s3, %s608_s7 }
  0x10   : > { %310 = vmatpush.msra.mxu0 %v267_v3  ;;  %609 = vmatpush.msra.mxu2 %v267_v3  ;;  %v266_v6 = vld [vmem:[%s239_s26 + $0x28] sm:$0xff]  ;;  %v263_v7 = vld [vmem:[%s239_s26 + $0x10] sm:$0xff]  ;;  %v264_v8 = vld [vmem:[%s239_s26 + $0x18] sm:$0xff] }
  0x11   : > { %348 = vmatpush.msra.mxu1 %v268_v4  ;;  %613 = vmatpush.msra.mxu3 %v268_v4  ;;  %v261_v9 = vld [vmem:[%s239_s26] sm:$0xff]  ;;  %v262_v10 = vld [vmem:[%s239_s26 + $0x8] sm:$0xff]  ;;  %v271_v20 = vld [vmem:[%s808_s1 + $0x10] sm:$0xff] }
  0x12   : > { %311 = vmatpush.msra.mxu0 %v265_v5  ;;  %610 = vmatpush.msra.mxu2 %v265_v5  ;;  %v378_v15 = vld [vmem:[%s809_s2 + $0x20] sm:$0xff]  ;;  %v379_v19 = vld [vmem:[%s809_s2 + $0x28] sm:$0xff]  ;;  %v275_v21 = vld [vmem:[%s808_s1 + $0x30] sm:$0x7f] }
  0x13   : > { %349 = vmatpush.msra.mxu1 %v266_v6  ;;  %614 = vmatpush.msra.mxu3 %v266_v6  ;;  %v272_v22 = vld [vmem:[%s808_s1 + $0x18] sm:$0xff] }
  0x14   : > { %312 = vmatpush.msra.mxu0 %v263_v7  ;;  %611 = vmatpush.msra.mxu2 %v263_v7 }
  0x15   : > { %350 = vmatpush.msra.mxu1 %v264_v8  ;;  %615 = vmatpush.msra.mxu3 %v264_v8 }
  0x16   : > { %313 = vmatpush.msra.mxu0 %v261_v9  ;;  %612 = vmatpush.msra.mxu2 %v261_v9 }
  0x17   : > { %351 = vmatpush.msra.mxu1 %v262_v10  ;;  %616 = vmatpush.msra.mxu3 %v262_v10 }
  0x18   : > { %591 = vmatmul.msk.f32.vlgmr.msra.gmra.mxu0 %vm276_vm0, %v269_v11  ;;  %595 = vmatmul.msk.f32.vlgmr.msra.gmra.mxu2 %vm276_vm0, %v273_v12 }
  0x19   : > { %598 = vmatmul.msk.f32.vlgmr.msra.gmra.mxu1 %vm276_vm0, %v269_v11  ;;  %602 = vmatmul.msk.f32.vlgmr.msra.gmra.mxu3 %vm276_vm0, %v273_v12 }
  0x1a   : > { %388 = vperm.xlu0 %643, %v375_v13   ;;  %398 = vperm.xlu1 %644, %v377_v14  }
  0x1b   : > { %403 = vperm.xlu2 %645, %v378_v15  }
  0x20   : > { %592 = vmatmul.msk.f32.gmra.mxu0 %vm276_vm0, %v270_v16  ;;  %596 = vmatmul.msk.f32.gmra.mxu2 %vm276_vm0, %v274_v17 }
  0x21   : > { %599 = vmatmul.msk.f32.gmra.mxu1 %vm276_vm0, %v270_v16  ;;  %603 = vmatmul.msk.f32.gmra.mxu3 %vm276_vm0, %v274_v17 }
  0x22   : > { %437 = vperm.xlu0 %643, %v380_v18  }
  0x23   : > { %408 = vperm.xlu2 %645, %v379_v19  }
  0x28   : > { %593 = vmatmul.msk.f32.gmra.mxu0 %vm276_vm0, %v271_v20  ;;  %597 = vmatmul.msk.f32.gmra.mxu2 %vm276_vm0, %v275_v21 }
  0x29   : > { %600 = vmatmul.msk.f32.gmra.mxu1 %vm276_vm0, %v271_v20  ;;  %604 = vmatmul.msk.f32.gmra.mxu3 %vm276_vm0, %v275_v21 }
  0x30   : > { %594 = vmatmul.msk.f32.gmra.mxu0 %vm276_vm0, %v272_v22 }
  0x31   : > { %601 = vmatmul.msk.f32.gmra.mxu1 %vm276_vm0, %v272_v22 }
  0x75   : > { %v404_v28 = vpop.permute.xlu2 %403 }
  0x7d   : > { %v409_v38 = vpop.permute.xlu2 %408 }
  0x80   : > { %v384_v23 = vpop.permute.xlu0 %383 }
  0x81   : > { %v394_v39 = vpop.permute.xlu1 %393 }
  0x8c   : > { %v389_v32 = vpop.permute.xlu0 %388  ;;  %v399_v52 = vpop.permute.xlu1 %398 }
  0x94   : > { %v438_v48 = vpop.permute.xlu0 %437 }
  0x95   : > { %v315_v24 = vpop.f32.mrf.mxu0 }
  0x96   : > { %v411_v25 = vadd.f32 %v384_v23, %v315_v24  ;;  %v353_v26 = vpop.f32.mrf.mxu1 }
  0x97   : > { %v412_v27 = vadd.f32 %v384_v23, %v353_v26 }
  0x98   : > { %423 = vst [vmem:[%s780_s6] sm:$0xff] %v411_v25 }
  0x99   : > { %424 = vst [vmem:[%s780_s6 + $0x8] sm:$0xff] %v412_v27 }
  0x9b   : > { %v327_v29 = vpop.f32.mrf.mxu2 }
  0x9c   : > { %v365_v30 = vpop.f32.mrf.mxu3  ;;  %v419_v31 = vadd.f32 %v404_v28, %v327_v29 }
  0x9d   : > { %v420_v33 = vadd.f32 %v404_v28, %v365_v30  ;;  %v318_v34 = vpop.f32.mrf.mxu0 }
  0x9e   : > { %431 = vst [vmem:[%s780_s6 + $0x40] sm:$0xff] %v419_v31  ;;  %v413_v35 = vadd.f32 %v389_v32, %v318_v34  ;;  %v356_v36 = vpop.f32.mrf.mxu1 }
  0x9f   : > { %432 = vst [vmem:[%s780_s6 + $0x48] sm:$0xff] %v420_v33  ;;  %v414_v37 = vadd.f32 %v389_v32, %v356_v36 }
  0xa0   : > { %425 = vst [vmem:[%s780_s6 + $0x10] sm:$0xff] %v413_v35 }
  0xa1   : > { %426 = vst [vmem:[%s780_s6 + $0x18] sm:$0xff] %v414_v37 }
  0xa3   : > { %v330_v40 = vpop.f32.mrf.mxu2 }
  0xa4   : > { %v368_v41 = vpop.f32.mrf.mxu3  ;;  %v421_v42 = vadd.f32 %v409_v38, %v330_v40 }
  0xa5   : > { %v422_v43 = vadd.f32 %v409_v38, %v368_v41  ;;  %v321_v44 = vpop.f32.mrf.mxu0 }
  0xa6   : > { %433 = vst [vmem:[%s780_s6 + $0x50] sm:$0xff] %v421_v42  ;;  %v415_v45 = vadd.f32 %v394_v39, %v321_v44  ;;  %v359_v46 = vpop.f32.mrf.mxu1 }
  0xa7   : > { %434 = vst [vmem:[%s780_s6 + $0x58] sm:$0xff] %v422_v43  ;;  %v416_v47 = vadd.f32 %v394_v39, %v359_v46 }
  0xa8   : > { %427 = vst [vmem:[%s780_s6 + $0x20] sm:$0xff] %v415_v45 }
  0xa9   : > { %428 = vst [vmem:[%s780_s6 + $0x28] sm:$0xff] %v416_v47 }
  0xab   : > { %v333_v49 = vpop.f32.mrf.mxu2 }
  0xac   : > { %v440_v50 = vadd.f32 %v438_v48, %v333_v49  ;;  %v371_v51 = vpop.f32.mrf.mxu3 }
  0xad   : > { %v441_v53 = vadd.f32 %v438_v48, %v371_v51  ;;  %v324_v54 = vpop.f32.mrf.mxu0 }
  0xae   : > { %442 = vst [vmem:[%s249_s10] sm:$0x7f] %v440_v50  ;;  %v417_v55 = vadd.f32 %v399_v52, %v324_v54  ;;  %v362_v56 = vpop.f32.mrf.mxu1 }
  0xaf   : > { %443 = vst [vmem:[%s249_s10 + $0x8] sm:$0x7f] %v441_v53  ;;  %v418_v57 = vadd.f32 %v399_v52, %v362_v56 }
  0xb0   : > { %429 = vst [vmem:[%s780_s6 + $0x30] sm:$0xff] %v417_v55 }
  0xb1   : > { %430 = vst [vmem:[%s780_s6 + $0x38] sm:$0xff] %v418_v57 }
  0xb2 PF: > { %s15_s17 = sadd.s32 1, %s668_s17   ;;  %s812_s15 = smov %s664_s16 }
  0xb3   : > { %p12_p5 = scmp.ge.s32.totalorder %s15_s17, 4   ;;  %s813_s16 = smov %s815_s18 }
  0xb5   :  { %14 = sbr.rel (!%p12_p5) target bundleno = 2 (0x2), region = 74 }

</bundles_post_ra>
